<compile_context>
chip_gen: v6e
topology: v6e:2x2x1
jax: 0.10.0
libtpu: 0.0.40
codegen_flags: <defaults>
</compile_context>

<pallas_src>
import jax
import jax.numpy as jnp
from jax.experimental import pallas as pl
from jax.experimental.pallas import tpu as pltpu

OBS_DIM = 32      # demo obs_dim (module allows any)
HIDDEN = 200      # logical hidden size of the PyTorch module
H_PAD = 256       # padded hidden size (multiple of 128)
BATCH = 8


def _round_up(n, m):
    return ((n + m - 1) // m) * m


def _choose_tile(batch, tile_b):
    """Pick (tile_rows, num_tiles): small tail padding, even tile count."""
    b8 = _round_up(max(batch, 1), 8)
    if b8 <= tile_b:
        return b8, 1                      # one tile covers the whole batch
    n = -(-b8 // tile_b)                  # tiles needed at the max tile size
    if n % 2:                             # even tile count -> balanced over the
        n += 1                            # 2 TensorCores on v7x ("parallel" axis)
    tb = _round_up(-(-b8 // n), 8)        # shrink tile to minimize tail waste
    n = -(-b8 // tb)
    return tb, n


def mlp_value_kernel(x_ref, w1_ref, b1_ref, w2_ref, b2_ref, w3_ref, o_ref):
    # Layer 1: (tb, D) @ (D, 256) on MXU (bf16 inputs, f32 accum); bias+ReLU f32.
    x = x_ref[...].astype(jnp.bfloat16)
    h1 = jnp.dot(x, w1_ref[...].astype(jnp.bfloat16),
                 preferred_element_type=jnp.float32)
    h1 = jnp.maximum(h1 + b1_ref[...], 0.0)
    # Layer 2: (tb, 256) @ (256, 256) on MXU; bias + ReLU in f32.
    h2 = jnp.dot(h1.astype(jnp.bfloat16), w2_ref[...].astype(jnp.bfloat16),
                 preferred_element_type=jnp.float32)
    h2 = jnp.maximum(h2 + b2_ref[...], 0.0)
    # Layer 3 (no bias, N=1): VPU multiply + XLU lane reduction, written
    # lane-dense as a (1, tb) row instead of a (tb, 1) column.
    v = jnp.sum(h2 * w3_ref[...], axis=-1)          # (tb,)
    o_ref[...] = v.reshape(1, -1)                    # (1, tb) full-lane store


def nn_value_function(x, params, *, tile_b=1024):
    """x: (B, obs_dim) f32; params: packed kernel params. Returns (B,) f32."""
    w1, b1, w2, b2, w3 = params
    B, D = x.shape
    H = w1.shape[1]
    # Guard the packed-param contract (zero-padded hidden, transposed layout).
    assert w1.shape == (D, H) and H % 128 == 0, (w1.shape, D, H)
    assert w2.shape == (H, H) and b1.shape == (1, H)
    assert b2.shape == (1, H) and w3.shape == (1, H)

    tb, num_tiles = _choose_tile(B, tile_b)
    Bp = tb * num_tiles
    if Bp != B:
        x = jnp.pad(x, ((0, Bp - B), (0, 0)))

    # Weights/biases: same block every grid step -> DMA'd once, VMEM-resident.
    resident = lambda shape: pl.BlockSpec(shape, lambda i: (0,) * len(shape))

    out = pl.pallas_call(
        mlp_value_kernel,
        out_shape=jax.ShapeDtypeStruct((num_tiles, tb), jnp.float32),
        grid=(num_tiles,),
        in_specs=[
            pl.BlockSpec((tb, D), lambda i: (i, 0)),   # x: tiled over batch
            resident((D, H)),                          # W1^T (f32)
            resident((1, H)),                          # b1   (f32)
            resident((H, H)),                          # W2^T (f32)
            resident((1, H)),                          # b2   (f32)
            resident((1, H)),                          # W3   (f32)
        ],
        out_specs=pl.BlockSpec((1, tb), lambda i: (i, 0)),
        compiler_params=pltpu.CompilerParams(
            dimension_semantics=("parallel",)),
    )(x, w1, b1, w2, b2, w3)
    # (num_tiles, tb) -> (Bp,) -> drop batch padding; reshape is contiguous/free.
    return out.reshape(-1)[:B]


def init_torch_params(key, obs_dim=OBS_DIM, hidden=HIDDEN):
    """Deterministic synthetic init in PyTorch layout / f32 dtypes."""
    k1, k2, k3, k4, k5 = jax.random.split(key, 5)
    s1 = 1.0 / jnp.sqrt(jnp.float32(obs_dim))
    s2 = 1.0 / jnp.sqrt(jnp.float32(hidden))
    W1 = jax.random.uniform(k1, (hidden, obs_dim), jnp.float32, -s1, s1)
    b1 = jax.random.uniform(k2, (hidden,), jnp.float32, -s1, s1)
    W2 = jax.random.uniform(k3, (hidden, hidden), jnp.float32, -s2, s2)
    b2 = jax.random.uniform(k4, (hidden,), jnp.float32, -s2, s2)
    W3 = jax.random.uniform(k5, (1, hidden), jnp.float32, -s2, s2)
    return W1, b1, W2, b2, W3


def pack_params(W1, b1, W2, b2, W3, h_pad=H_PAD):
    """PyTorch layout -> kernel layout: transpose, zero-pad hidden, keep f32."""
    hidden, obs_dim = W1.shape
    w1 = jnp.zeros((obs_dim, h_pad), jnp.float32).at[:, :hidden].set(W1.T)
    b1p = jnp.zeros((1, h_pad), jnp.float32).at[0, :hidden].set(b1)
    w2 = jnp.zeros((h_pad, h_pad), jnp.float32).at[:hidden, :hidden].set(W2.T)
    b2p = jnp.zeros((1, h_pad), jnp.float32).at[0, :hidden].set(b2)
    w3 = jnp.zeros((1, h_pad), jnp.float32).at[0, :hidden].set(W3[0])
    return (w1, b1p, w2, b2p, w3)


def reference(x, W1, b1, W2, b2, W3):
    """Pure-JAX reference mirroring kernel numerics (bf16 MXU inputs, f32 accum)."""
    bf = lambda a: a.astype(jnp.bfloat16).astype(jnp.float32)
    h1 = jnp.maximum(jnp.dot(bf(x), bf(W1).T) + b1, 0.0)
    h2 = jnp.maximum(jnp.dot(bf(h1), bf(W2).T) + b2, 0.0)
    return jnp.sum(h2 * W3[0], axis=-1)


if __name__ == "__main__":
    key = jax.random.PRNGKey(0)
    kx, kp = jax.random.split(key)
    torch_params = init_torch_params(kp)
    params = pack_params(*torch_params)

    # Small-shape check (B=8, obs_dim=32), single grid step.
    x = jax.random.normal(kx, (BATCH, OBS_DIM), jnp.float32)
    out = jax.block_until_ready(nn_value_function(x, params))
    ref = reference(x, *torch_params)
    assert out.shape == (BATCH,)
    assert jnp.allclose(out, ref, atol=1e-3, rtol=1e-3), (out, ref)

    # Multi-tile check with a small forced tile: B=520, tile_b=128 -> 6 tiles
    # of 88 rows (even tile count, 8-row tail pad), exercising grid>1 and the
    # batch-padding path.
    x2 = jax.random.normal(kx, (520, OBS_DIM), jnp.float32)
    out2 = jax.block_until_ready(nn_value_function(x2, params, tile_b=128))
    ref2 = reference(x2, *torch_params)
    assert out2.shape == (520,)
    assert jnp.allclose(out2, ref2, atol=1e-3, rtol=1e-3)

    print("KERNEL_OK")
</pallas_src>

<mosaic_0001>
module attributes {stable_mosaic.version = 11 : i64} {
  func.func @mlp_value_kernel(%arg0: i32, %arg1: memref<8x32xf32, #tpu.memory_space<vmem>>, %arg2: memref<32x256xf32, #tpu.memory_space<vmem>>, %arg3: memref<1x256xf32, #tpu.memory_space<vmem>>, %arg4: memref<256x256xf32, #tpu.memory_space<vmem>>, %arg5: memref<1x256xf32, #tpu.memory_space<vmem>>, %arg6: memref<1x256xf32, #tpu.memory_space<vmem>>, %arg7: memref<1x8xf32, #tpu.memory_space<vmem>>) attributes {dimension_semantics = [#tpu.dimension_semantics<parallel>], iteration_bounds = array<i64: 1>, scalar_prefetch = 0 : i64, scratch_operands = 0 : i64, tpu.core_type = #tpu.core_type<tc>, window_params = [{transform_indices = @transform_0, window_bounds = array<i64: 8, 32>}, {pipeline_mode = #tpu.pipeline_mode<synchronous>, transform_indices = @transform_1, window_bounds = array<i64: 32, 256>}, {pipeline_mode = #tpu.pipeline_mode<synchronous>, transform_indices = @transform_2, window_bounds = array<i64: 1, 256>}, {pipeline_mode = #tpu.pipeline_mode<synchronous>, transform_indices = @transform_3, window_bounds = array<i64: 256, 256>}, {pipeline_mode = #tpu.pipeline_mode<synchronous>, transform_indices = @transform_4, window_bounds = array<i64: 1, 256>}, {pipeline_mode = #tpu.pipeline_mode<synchronous>, transform_indices = @transform_5, window_bounds = array<i64: 1, 256>}, {transform_indices = @transform_6, window_bounds = array<i64: 1, 8>}]} {
    %c0 = arith.constant 0 : index
    %c0_0 = arith.constant 0 : index
    %0 = vector.load %arg1[%c0, %c0_0] : memref<8x32xf32, #tpu.memory_space<vmem>>, vector<8x32xf32>
    %1 = arith.truncf %0 : vector<8x32xf32> to vector<8x32xbf16>
    %c0_1 = arith.constant 0 : index
    %c0_2 = arith.constant 0 : index
    %2 = vector.load %arg2[%c0_1, %c0_2] : memref<32x256xf32, #tpu.memory_space<vmem>>, vector<32x256xf32>
    %3 = arith.truncf %2 : vector<32x256xf32> to vector<32x256xbf16>
    %cst = arith.constant dense<0.000000e+00> : vector<8x256xf32>
    %4 = tpu.matmul %1, %3, %cst {dimension_numbers = #tpu.dot_dimension_numbers<[1], [0], [0], [1], [0, 0, 1, 1], [], []>} : vector<8x32xbf16>, vector<32x256xbf16>, vector<8x256xf32> -> vector<8x256xf32>
    %c0_3 = arith.constant 0 : index
    %c0_4 = arith.constant 0 : index
    %5 = vector.load %arg3[%c0_3, %c0_4] : memref<1x256xf32, #tpu.memory_space<vmem>>, vector<1x256xf32>
    %6 = vector.broadcast %5 : vector<1x256xf32> to vector<8x256xf32>
    %7 = arith.addf %4, %6 : vector<8x256xf32>
    %cst_5 = arith.constant 0.000000e+00 : f32
    %8 = vector.broadcast %cst_5 : f32 to vector<8x256xf32>
    %9 = arith.maximumf %7, %8 : vector<8x256xf32>
    %10 = arith.truncf %9 : vector<8x256xf32> to vector<8x256xbf16>
    %c0_6 = arith.constant 0 : index
    %c0_7 = arith.constant 0 : index
    %11 = vector.load %arg4[%c0_6, %c0_7] : memref<256x256xf32, #tpu.memory_space<vmem>>, vector<256x256xf32>
    %12 = arith.truncf %11 : vector<256x256xf32> to vector<256x256xbf16>
    %cst_8 = arith.constant dense<0.000000e+00> : vector<8x256xf32>
    %13 = tpu.matmul %10, %12, %cst_8 {dimension_numbers = #tpu.dot_dimension_numbers<[1], [0], [0], [1], [0, 0, 1, 1], [], []>} : vector<8x256xbf16>, vector<256x256xbf16>, vector<8x256xf32> -> vector<8x256xf32>
    %c0_9 = arith.constant 0 : index
    %c0_10 = arith.constant 0 : index
    %14 = vector.load %arg5[%c0_9, %c0_10] : memref<1x256xf32, #tpu.memory_space<vmem>>, vector<1x256xf32>
    %15 = vector.broadcast %14 : vector<1x256xf32> to vector<8x256xf32>
    %16 = arith.addf %13, %15 : vector<8x256xf32>
    %cst_11 = arith.constant 0.000000e+00 : f32
    %17 = vector.broadcast %cst_11 : f32 to vector<8x256xf32>
    %18 = arith.maximumf %16, %17 : vector<8x256xf32>
    %c0_12 = arith.constant 0 : index
    %c0_13 = arith.constant 0 : index
    %19 = vector.load %arg6[%c0_12, %c0_13] : memref<1x256xf32, #tpu.memory_space<vmem>>, vector<1x256xf32>
    %20 = vector.broadcast %19 : vector<1x256xf32> to vector<8x256xf32>
    %21 = arith.mulf %18, %20 : vector<8x256xf32>
    %cst_14 = arith.constant dense<0.000000e+00> : vector<8xf32>
    %22 = vector.multi_reduction <add>, %21, %cst_14 [1] : vector<8x256xf32> to vector<8xf32>
    %23 = vector.shape_cast %22 : vector<8xf32> to vector<1x8xf32>
    %c0_15 = arith.constant 0 : index
    %c0_16 = arith.constant 0 : index
    %24 = vector.load %arg7[%c0_15, %c0_16] : memref<1x8xf32, #tpu.memory_space<vmem>>, vector<1x8xf32>
    tpu.vector_store %arg7[%c0_15, %c0_16], %23 {strides = array<i32>} : memref<1x8xf32, #tpu.memory_space<vmem>>, vector<1x8xf32>,
    return
  }
  func.func @transform_0(%arg0: i32) -> (i32, i32) {
    %c0_i32 = arith.constant 0 : i32
    %c0_i32_0 = arith.constant 0 : i32
    return %arg0, %c0_i32 : i32, i32
  }
  func.func @transform_1(%arg0: i32) -> (i32, i32) {
    %c0_i32 = arith.constant 0 : i32
    %c0_i32_0 = arith.constant 0 : i32
    %c0_i32_1 = arith.constant 0 : i32
    return %c0_i32, %c0_i32_0 : i32, i32
  }
  func.func @transform_2(%arg0: i32) -> (i32, i32) {
    %c0_i32 = arith.constant 0 : i32
    %c0_i32_0 = arith.constant 0 : i32
    %c0_i32_1 = arith.constant 0 : i32
    return %c0_i32, %c0_i32_0 : i32, i32
  }
  func.func @transform_3(%arg0: i32) -> (i32, i32) {
    %c0_i32 = arith.constant 0 : i32
    %c0_i32_0 = arith.constant 0 : i32
    %c0_i32_1 = arith.constant 0 : i32
    return %c0_i32, %c0_i32_0 : i32, i32
  }
  func.func @transform_4(%arg0: i32) -> (i32, i32) {
    %c0_i32 = arith.constant 0 : i32
    %c0_i32_0 = arith.constant 0 : i32
    %c0_i32_1 = arith.constant 0 : i32
    return %c0_i32, %c0_i32_0 : i32, i32
  }
  func.func @transform_5(%arg0: i32) -> (i32, i32) {
    %c0_i32 = arith.constant 0 : i32
    %c0_i32_0 = arith.constant 0 : i32
    %c0_i32_1 = arith.constant 0 : i32
    return %c0_i32, %c0_i32_0 : i32, i32
  }
  func.func @transform_6(%arg0: i32) -> (i32, i32) {
    %c0_i32 = arith.constant 0 : i32
    %c0_i32_0 = arith.constant 0 : i32
    return %arg0, %c0_i32 : i32, i32
  }
}

</mosaic_0001>

<bundles_post_ra>
// kernel: tpu_custom_call.1
= control target key start
LH: loop header
LB: loop body
LE: loop exit
PB: predicated region body
PF: predicated region fallthrough
CT: control target
= control target key end

     0   :  { %11 = vsyncpa [#allocation3], 0  ;;  %s490_s0 = inlined_call_operand.hbm [shape: f32[8,32], index: 0, kind: input, shape index: {}]   ;;  %s491_s1 = inlined_call_operand.hbm [shape: f32[32,256], index: 1, kind: input, shape index: {}]   ;;  %s492_s2 = inlined_call_operand.vmem [shape: f32[1,256], index: 2, kind: input, shape index: {}]   ;;  %s493_s3 = inlined_call_operand.hbm [shape: f32[256,256], index: 3, kind: input, shape index: {}]   ;;  %s494_s4 = inlined_call_operand.vmem [shape: f32[1,256], index: 4, kind: input, shape index: {}]   ;;  %s495_s5 = inlined_call_operand.vmem [shape: f32[1,256], index: 5, kind: input, shape index: {}]   ;;  %s496_s6 = inlined_call_operand.hbm [shape: f32[1,8], index: 6, kind: output, shape index: {}]  }
   0x1   :  { %12 = vsyncpa [#allocation6], 0 }
   0x2   :  { %13 = vsyncpa [#allocation4], 0  ;;  %s427_s21 = smov [#allocation5]  }
   0x3   :  { %s29_s22 = sshll.u32 %s427_s21, 4  ;;  %s30_s22 = int_to_ptr.vmem [resolvable:$true] %s29_s22 }
   0x4   :  { %s349_s23 = scalar_lea.vmem %s30_s22, 1024  ;;  %p354_p1 = scmp.lt.s32.totalorder %s30_s22, %s30_s22 }
   0x5   :  { %p350_p0 = scmp.ne.s32.totalorder %s30_s22, %s349_s23  ;;  %p355_p2 = scmp.lt.s32.totalorder %s349_s23, %s349_s23 }
   0x7   :  { %p356_p3 = por %p355_p2, %p354_p1 }
   0x9   :  { %p357_p4 = pnand %p356_p3, %p350_p0 }
   0xb   :  { %360 = shalt.err (!%p357_p4)
}
   0xc   :  { %s428_s24 = smov 256   ;;  %s429_s25 = smov 16  }
   0xd   :  { %35 = dma.hbm_to_vmem [thread:$0]  %s491_s1, 1024, %s30_s22, [#allocation6], %s428_s24, %s428_s24, %s429_s25  }
   0xe   :  { %s430_s28 = smov [#allocation2]   ;;  %s431_s30 = smov [#allocation7]  }
   0xf   :  { %s20_s29 = sshll.u32 %s430_s28, 4  ;;  %s43_s7 = sshll.u32 %s431_s30, 4  ;;  %s21_s29 = int_to_ptr.vmem [resolvable:$true] %s20_s29  ;;  %s44_s7 = int_to_ptr.vmem [resolvable:$true] %s43_s7 }
  0x10   :  { %s369_s8 = scalar_lea.vmem %s21_s29, 128  ;;  %p374_p6 = scmp.lt.s32.totalorder %s21_s29, %s21_s29 }
  0x11   :  { %p370_p5 = scmp.ne.s32.totalorder %s21_s29, %s369_s8  ;;  %p375_p7 = scmp.lt.s32.totalorder %s369_s8, %s369_s8 }
  0x13   :  { %p376_p8 = por %p375_p7, %p374_p6 }
  0x15   :  { %p377_p9 = pnand %p376_p8, %p370_p5 }
  0x17   :  { %380 = shalt.err (!%p377_p9)
}
  0x18   :  { %23 = dma.hbm_to_vmem [thread:$0]  %s490_s0, 128, %s21_s29, [#allocation3]  }
  0x19   :  { %s389_s11 = scalar_lea.vmem %s44_s7, 8192  ;;  %p394_p11 = scmp.lt.s32.totalorder %s44_s7, %s44_s7 }
  0x1a   :  { %p390_p10 = scmp.ne.s32.totalorder %s44_s7, %s389_s11  ;;  %p395_p12 = scmp.lt.s32.totalorder %s389_s11, %s389_s11 }
  0x1c   :  { %p396_p13 = por %p395_p12, %p394_p11 }
  0x1e   :  { %p397_p0 = pnand %p396_p13, %p390_p10 }
  0x20   :  { %400 = shalt.err (!%p397_p0)
}
  0x21   :  { %49 = dma.hbm_to_vmem [thread:$0]  %s493_s3, 8192, %s44_s7, [#allocation6], %s428_s24, %s428_s24, %s429_s25  }
  0x22   :  { %421 = dma.done.wait [#allocation3], 128  }
  0x23   :  { %422 = vsyncadd [#allocation3], 4294967168 }
  0x24   :  { %423 = dma.done.wait [#allocation6], 9216  }
  0x25   :  { %424 = vsyncadd [#allocation6], 4294958080  ;;  %v432_v0 = vmov 0   ;;  %v71_v1 = vld [vmem:[#allocation5 + $0x28] sm:$0xff]  ;;  %v73_v2 = vld [vmem:[#allocation5 + $0x38] sm:$0xff]  ;;  %vm90_vm0 = vcmask 261120  }
  0x26   :  { %126 = vmatprep.mubr.bf16.mxu0 %v432_v0  ;;  %v70_v3 = vld [vmem:[#allocation5 + $0x20] sm:$0xff]  ;;  %v77_v4 = vpack.c.bf16 %v73_v2, %v71_v1  ;;  %v72_v5 = vld [vmem:[#allocation5 + $0x30] sm:$0xff]  ;;  %v67_v6 = vld [vmem:[#allocation5 + $0x8] sm:$0xff]  ;;  %vm315_vm1 = vcmask 57344  }
  0x27   :  { %v69_v7 = vld [vmem:[#allocation5 + $0x18] sm:$0xff]  ;;  %v76_v8 = vpack.c.bf16 %v72_v5, %v70_v3  ;;  %v66_v10 = vld [vmem:[#allocation5] sm:$0xff]  ;;  %v68_v11 = vld [vmem:[#allocation5 + $0x10] sm:$0xff] }
  0x28   :  { %v75_v9 = vpack.c.bf16 %v69_v7, %v67_v6  ;;  %v64_v12 = vld [vmem:[#allocation2] sm:$0xff]  ;;  %106 = vmatprep.subr.bf16.mxu0 %v77_v4  ;;  %v168_v13 = vld [vmem:[#allocation7 + $0xe8] sm:$0xff]  ;;  %v167_v15 = vld [vmem:[#allocation7 + $0xe0] sm:$0xff]  ;;  %v74_v16 = vpack.c.bf16 %v68_v11, %v66_v10 }
  0x29   :  { %v170_v14 = vld [vmem:[#allocation7 + $0xf8] sm:$0xff]  ;;  %107 = vmatpush1.bf16.msra.mxu0 %v76_v8  ;;  %v169_v18 = vld [vmem:[#allocation7 + $0xf0] sm:$0xff]  ;;  %v164_v19 = vld [vmem:[#allocation7 + $0xc8] sm:$0xff]  ;;  %v65_v27 = vpack.c.bf16 %v64_v12, %v64_v12 }
  0x2a   :  { %v218_v17 = vpack.c.bf16 %v170_v14, %v168_v13  ;;  %v166_v20 = vld [vmem:[#allocation7 + $0xd8] sm:$0xff]  ;;  %108 = vmatprep.subr.bf16.mxu0 %v75_v9  ;;  %v217_v21 = vpack.c.bf16 %v169_v18, %v167_v15  ;;  %v163_v23 = vld [vmem:[#allocation7 + $0xc0] sm:$0xff]  ;;  %v165_v24 = vld [vmem:[#allocation7 + $0xd0] sm:$0xff] }
  0x2b   :  { %v216_v22 = vpack.c.bf16 %v166_v20, %v164_v19  ;;  %v160_v25 = vld [vmem:[#allocation7 + $0xa8] sm:$0xff]  ;;  %v162_v26 = vld [vmem:[#allocation7 + $0xb8] sm:$0xff]  ;;  %v215_v28 = vpack.c.bf16 %v165_v24, %v163_v23  ;;  %v159_v30 = vld [vmem:[#allocation7 + $0xa0] sm:$0xff] }
  0x2c   :  { %247 = vmatprep.subr.bf16.mxu1 %v218_v17  ;;  %v214_v29 = vpack.c.bf16 %v162_v26, %v160_v25  ;;  %v161_v31 = vld [vmem:[#allocation7 + $0xb0] sm:$0xff]  ;;  %v156_v32 = vld [vmem:[#allocation7 + $0x88] sm:$0xff]  ;;  %v158_v33 = vld [vmem:[#allocation7 + $0x98] sm:$0xff] }
  0x2d   :  { %248 = vmatpush1.bf16.msra.mxu1 %v217_v21  ;;  %109 = vmatpush1.bf16.msra.mxu0 %v74_v16  ;;  %v213_v34 = vpack.c.bf16 %v161_v31, %v159_v30  ;;  %v212_v35 = vpack.c.bf16 %v158_v33, %v156_v32  ;;  %v155_v36 = vld [vmem:[#allocation7 + $0x80] sm:$0xff]  ;;  %v157_v37 = vld [vmem:[#allocation7 + $0x90] sm:$0xff]  ;;  %v152_v38 = vld [vmem:[#allocation7 + $0x68] sm:$0xff] }
  0x2e   :  { %249 = vmatprep.subr.bf16.mxu1 %v216_v22  ;;  %v154_v39 = vld [vmem:[#allocation7 + $0x78] sm:$0xff]  ;;  %v211_v40 = vpack.c.bf16 %v157_v37, %v155_v36  ;;  %v151_v42 = vld [vmem:[#allocation7 + $0x60] sm:$0xff]  ;;  %v153_v43 = vld [vmem:[#allocation7 + $0x70] sm:$0xff] }
  0x2f   :  { %v210_v41 = vpack.c.bf16 %v154_v39, %v152_v38  ;;  %v148_v44 = vld [vmem:[#allocation7 + $0x48] sm:$0xff]  ;;  %v150_v45 = vld [vmem:[#allocation7 + $0x58] sm:$0xff]  ;;  %v209_v46 = vpack.c.bf16 %v153_v43, %v151_v42  ;;  %v147_v48 = vld [vmem:[#allocation7 + $0x40] sm:$0xff] }
  0x30   :  { %333 = vmatmul.mubr.msk.bf16.vlgmr.msra.gmra.mxu0 %vm90_vm0, %v65_v27  ;;  %v208_v47 = vpack.c.bf16 %v150_v45, %v148_v44  ;;  %v149_v49 = vld [vmem:[#allocation7 + $0x50] sm:$0xff]  ;;  %v144_v50 = vld [vmem:[#allocation7 + $0x28] sm:$0xff]  ;;  %v146_v51 = vld [vmem:[#allocation7 + $0x38] sm:$0xff] }
  0x31   :  { %250 = vmatpush1.bf16.msra.mxu1 %v215_v28  ;;  %v207_v52 = vpack.c.bf16 %v149_v49, %v147_v48  ;;  %v206_v53 = vpack.c.bf16 %v146_v51, %v144_v50  ;;  %v143_v54 = vld [vmem:[#allocation7 + $0x20] sm:$0xff]  ;;  %v145_v55 = vld [vmem:[#allocation7 + $0x30] sm:$0xff]  ;;  %v140_v56 = vld [vmem:[#allocation7 + $0x8] sm:$0xff] }
  0x32   :  { %251 = vmatprep.subr.bf16.mxu1 %v214_v29  ;;  %v142_v57 = vld [vmem:[#allocation7 + $0x18] sm:$0xff]  ;;  %v205_v58 = vpack.c.bf16 %v145_v55, %v143_v54  ;;  %v139_v60 = vld [vmem:[#allocation7] sm:$0xff]  ;;  %v141_v61 = vld [vmem:[#allocation7 + $0x10] sm:$0xff] }
  0x33   :  { %v204_v59 = vpack.c.bf16 %v142_v57, %v140_v56  ;;  %v200_v62 = vld [vmem:[#allocation7 + $0x1e8] sm:$0xff]  ;;  %v202_v63 = vld [vmem:[#allocation7 + $0x1f8] sm:$0xff]  ;;  %v203_v0 = vpack.c.bf16 %v141_v61, %v139_v60  ;;  %v199_v2 = vld [vmem:[#allocation7 + $0x1e0] sm:$0xff] }
  0x34   :  { %v234_v1 = vpack.c.bf16 %v202_v63, %v200_v62  ;;  %v201_v3 = vld [vmem:[#allocation7 + $0x1f0] sm:$0xff]  ;;  %v196_v4 = vld [vmem:[#allocation7 + $0x1c8] sm:$0xff]  ;;  %v198_v5 = vld [vmem:[#allocation7 + $0x1d8] sm:$0xff] }
  0x35   :  { %252 = vmatpush1.bf16.msra.mxu1 %v213_v34  ;;  %v233_v6 = vpack.c.bf16 %v201_v3, %v199_v2  ;;  %v232_v7 = vpack.c.bf16 %v198_v5, %v196_v4  ;;  %v195_v8 = vld [vmem:[#allocation7 + $0x1c0] sm:$0xff]  ;;  %v197_v9 = vld [vmem:[#allocation7 + $0x1d0] sm:$0xff]  ;;  %v192_v10 = vld [vmem:[#allocation7 + $0x1a8] sm:$0xff] }
  0x36   :  { %253 = vmatprep.subr.bf16.mxu1 %v212_v35  ;;  %v194_v11 = vld [vmem:[#allocation7 + $0x1b8] sm:$0xff]  ;;  %v231_v12 = vpack.c.bf16 %v197_v9, %v195_v8  ;;  %v191_v14 = vld [vmem:[#allocation7 + $0x1a0] sm:$0xff]  ;;  %v193_v15 = vld [vmem:[#allocation7 + $0x1b0] sm:$0xff] }
  0x37   :  { %v230_v13 = vpack.c.bf16 %v194_v11, %v192_v10  ;;  %v188_v16 = vld [vmem:[#allocation7 + $0x188] sm:$0xff]  ;;  %v190_v17 = vld [vmem:[#allocation7 + $0x198] sm:$0xff]  ;;  %v229_v18 = vpack.c.bf16 %v193_v15, %v191_v14  ;;  %v187_v20 = vld [vmem:[#allocation7 + $0x180] sm:$0xff] }
  0x38   :  { %v228_v19 = vpack.c.bf16 %v190_v17, %v188_v16  ;;  %v189_v21 = vld [vmem:[#allocation7 + $0x190] sm:$0xff]  ;;  %v184_v22 = vld [vmem:[#allocation7 + $0x168] sm:$0xff]  ;;  %v186_v23 = vld [vmem:[#allocation7 + $0x178] sm:$0xff] }
  0x39   :  { %254 = vmatpush1.bf16.msra.mxu1 %v211_v40  ;;  %v227_v24 = vpack.c.bf16 %v189_v21, %v187_v20  ;;  %v226_v25 = vpack.c.bf16 %v186_v23, %v184_v22  ;;  %v183_v26 = vld [vmem:[#allocation7 + $0x160] sm:$0xff]  ;;  %v185_v27 = vld [vmem:[#allocation7 + $0x170] sm:$0xff]  ;;  %v180_v28 = vld [vmem:[#allocation7 + $0x148] sm:$0xff] }
  0x3a   :  { %255 = vmatprep.subr.bf16.mxu1 %v210_v41  ;;  %v182_v29 = vld [vmem:[#allocation7 + $0x158] sm:$0xff]  ;;  %v225_v30 = vpack.c.bf16 %v185_v27, %v183_v26  ;;  %v179_v32 = vld [vmem:[#allocation7 + $0x140] sm:$0xff]  ;;  %v181_v33 = vld [vmem:[#allocation7 + $0x150] sm:$0xff] }
  0x3b   :  { %v224_v31 = vpack.c.bf16 %v182_v29, %v180_v28  ;;  %v223_v34 = vpack.c.bf16 %v181_v33, %v179_v32  ;;  %v176_v35 = vld [vmem:[#allocation7 + $0x128] sm:$0xff]  ;;  %v178_v36 = vld [vmem:[#allocation7 + $0x138] sm:$0xff]  ;;  %v175_v38 = vld [vmem:[#allocation7 + $0x120] sm:$0xff] }
  0x3c   :  { %v222_v37 = vpack.c.bf16 %v178_v36, %v176_v35  ;;  %v177_v39 = vld [vmem:[#allocation7 + $0x130] sm:$0xff]  ;;  %v172_v41 = vld [vmem:[#allocation7 + $0x108] sm:$0xff]  ;;  %v174_v42 = vld [vmem:[#allocation7 + $0x118] sm:$0xff] }
  0x3d   :  { %256 = vmatpush1.bf16.msra.mxu1 %v209_v46  ;;  %v221_v40 = vpack.c.bf16 %v177_v39, %v175_v38  ;;  %v220_v43 = vpack.c.bf16 %v174_v42, %v172_v41  ;;  %v171_v44 = vld [vmem:[#allocation7 + $0x100] sm:$0xff]  ;;  %v173_v45 = vld [vmem:[#allocation7 + $0x110] sm:$0xff]  ;;  %v78_v50 = vld [vmem:[%s492_s2] sm:$0x3] }
  0x3e   :  { %257 = vmatprep.subr.bf16.mxu1 %v208_v47  ;;  %v219_v46 = vpack.c.bf16 %v173_v45, %v171_v44  ;;  %v80_v47 = vlaneseq  ;;  %v290_v4 = vld [vmem:[%s495_s5] sm:$0x3] }
  0x40   :  { %v81_v48 = vshrl.u32 %v80_v47, 7  ;;  %v309_v17 = vand.u32 127, %v80_v47 }
  0x41   :  { %258 = vmatpush1.bf16.msra.mxu1 %v207_v52 }
  0x42   :  { %259 = vmatprep.subr.bf16.mxu1 %v206_v53  ;;  %v82_v49 = vsub.s32 0, %v81_v48  ;;  %v86_v51 = vsub.s32 1, %v81_v48 }
  0x44   :  { %v83_v52 = vrot.slane %v78_v50, %v82_v49  ;;  %v87_v53 = vrot.slane %v78_v50, %v86_v51  ;;  %v295_v9 = vrot.slane %v290_v4, %v82_v49  ;;  %v299_v10 = vrot.slane %v290_v4, %v86_v51 }
  0x45   :  { %260 = vmatpush1.bf16.msra.mxu1 %v205_v58 }
  0x46   :  { %261 = vmatprep.subr.bf16.mxu1 %v204_v59 }
  0x49   :  { %262 = vmatpush1.bf16.msra.mxu1 %v203_v0  ;;  %v235_v0 = vld [vmem:[%s494_s4] sm:$0x3]  ;;  %s433_s4 = smov [#allocation8]  }
  0x4a   :  { %263 = vmatprep.subr.bf16.mxu1 %v234_v1  ;;  %v240_v1 = vrot.slane %v235_v0, %v82_v49  ;;  %v244_v2 = vrot.slane %v235_v0, %v86_v51  ;;  %s323_s16 = sshll.u32 %s433_s4, 4  ;;  %s324_s16 = int_to_ptr.vmem [resolvable:$true] %s323_s16 }
  0x4b   :  { %s401_s5 = scalar_lea.vmem %s324_s16, 16  ;;  %s405_s17 = scalar_lea.vmem %s324_s16, 32 }
  0x4c   :  { %p402_p1 = scmp.ne.s32.totalorder %s324_s16, %s401_s5  ;;  %p406_p2 = scmp.lt.s32.totalorder %s324_s16, %s324_s16 }
  0x4d   :  { %264 = vmatpush2.bf16.msra.mxu1 %v233_v6  ;;  %p407_p3 = scmp.lt.s32.totalorder %s405_s17, %s401_s5 }
  0x4e   :  { %265 = vmatprep.subr.bf16.mxu1 %v232_v7 }
  0x4f   :  { %p408_p4 = por %p407_p3, %p406_p2 }
  0x51   :  { %266 = vmatpush2.bf16.msra.mxu1 %v231_v12  ;;  %p409_p5 = pnand %p408_p4, %p402_p1 }
  0x52   :  { %267 = vmatprep.subr.bf16.mxu1 %v230_v13 }
  0x55   :  { %268 = vmatpush2.bf16.msra.mxu1 %v229_v18  ;;  %v312_v18 = vsub.s32 %v309_v17, %v81_v48 }
  0x56   :  { %269 = vmatprep.subr.bf16.mxu1 %v228_v19 }
  0x59   :  { %270 = vmatpush2.bf16.msra.mxu1 %v227_v24 }
  0x5a   :  { %271 = vmatprep.subr.bf16.mxu1 %v226_v25 }
  0x5d   :  { %272 = vmatpush2.bf16.msra.mxu1 %v225_v30 }
  0x5e   :  { %273 = vmatprep.subr.bf16.mxu1 %v224_v31 }
  0x61   :  { %274 = vmatpush2.bf16.msra.mxu1 %v223_v34 }
  0x62   :  { %275 = vmatprep.subr.bf16.mxu1 %v222_v37 }
  0x65   :  { %276 = vmatpush2.bf16.msra.mxu1 %v221_v40 }
  0x66   :  { %277 = vmatprep.subr.bf16.mxu1 %v220_v43 }
  0x69   :  { %278 = vmatpush2.bf16.msra.mxu1 %v219_v46 }
  0xf0   :  { %v128_v54 = vpop.f32.mrf.mxu0 }
  0xf1   :  { %v129_v55 = vadd.f32 %v128_v54, %v83_v52 }
  0xf2   :  { %v130_v56 = vpop.f32.mrf.mxu0 }
  0xf3   :  { %v131_v57 = vadd.f32 %v130_v56, %v87_v53  ;;  %v135_v58 = vmax.f32 %v129_v55, 0.0 }
  0xf4   :  { %v132_v59 = vpop.f32.mrf.mxu0 }
  0xf5   :  { %v136_v60 = vmax.f32 %v131_v57, 0.0  ;;  %v137_v63 = vpack.c.bf16 %v135_v58, %v135_v58 }
  0xf6   :  { %v133_v61 = vpop.f32.mrf.mxu0 }
  0xf7   :  { %v138_v62 = vpack.c.bf16 %v136_v60, %v136_v60 }
  0xf9   :  { %279 = vmatprep.mubr.bf16.mxu1 %v138_v62 }
  0xfa   :  { %280 = vmatmul.mubr.bf16.vlgmr.msra.gmra.mxu1 %v137_v63 }
 0x1ba   :  { %v281_v3 = vpop.f32.mrf.mxu1 }
 0x1bb   :  { %v282_v5 = vadd.f32 %v281_v3, %v240_v1 }
 0x1bc   :  { %v283_v6 = vpop.f32.mrf.mxu1 }
 0x1bd   :  { %v288_v7 = vmax.f32 %v282_v5, 0.0  ;;  %v284_v8 = vadd.f32 %v283_v6, %v244_v2 }
 0x1be   :  { %v285_v11 = vpop.f32.mrf.mxu1 }
 0x1bf   :  { %v289_v12 = vmax.f32 %v284_v8, 0.0  ;;  %v302_v14 = vmul.f32 %v295_v9, %v288_v7 }
 0x1c0   :  { %v286_v13 = vpop.f32.mrf.mxu1 }
 0x1c1   :  { %v303_v15 = vmul.f32 %v299_v10, %v289_v12 }
 0x1c3   :  { %v304_v16 = vadd.f32 %v303_v15, %v302_v14 }
 0x1c5   :  { %305 = vadd.xlane.f32.xlu0 %v304_v16 }
 0x24e   :  { %v306_v19 = vpop.xlane.xlu0 %305 }
 0x24f   :  { %v313_v20 = vrot.slane %v306_v19, %v312_v18 }
 0x251   :  { %316 = vst.msk [vmem:[#allocation8] sm:$0x1] %vm315_vm1, %v313_v20 }
 0x252   :  { %412 = shalt.err (!%p409_p5)
}
 0x253   :  { %326 = dma.vmem_to_hbm [thread:$0]  %s324_s16, 16, %s496_s6, [#allocation4]  }
 0x254   :  { %425 = dma.done.wait [#allocation4], 16  }
 0x255   :  { %426 = vsyncadd [#allocation4], 4294967280 }
 0x256   :  { %330 = vsyncpa [#allocation3], 1 }
 0x257   :  { %331 = vsyncpa [#allocation6], 1 }
 0x258   :  { %332 = vsyncpa [#allocation4], 1 }

</bundles_post_ra>
